<compile_context>
chip_gen: v7x
topology: tpu7x:2x2x1
jax: 0.10.0
libtpu: 0.0.40
codegen_flags: <defaults>
</compile_context>

<pallas_src>
import jax
import jax.numpy as jnp
from jax.experimental import pallas as pl
from jax.experimental.pallas import tpu as pltpu


def _round_up(x, m):
    return (x + m - 1) // m * m


def _cdiv(a, b):
    return (a + b - 1) // b


def _vmem_capacity_bytes():
    try:
        return int(pltpu.get_tpu_info().vmem_capacity_bytes)
    except Exception:
        return 64 * 1024 * 1024  # conservative default (v7x per-core VMEM)


# ---------------------------------------------------------------------------
# Kernels
# ---------------------------------------------------------------------------
def _ffn_kernel(x_ref, w1_ref, b1_ref, w2_ref, b2_ref, o_ref):
    """Resident-weights path: x (tm, Hd); W1^T/W2^T (Hd, Hd); biases (1, Hd) f32."""
    x = x_ref[...]
    h = jnp.dot(x, w1_ref[...], preferred_element_type=jnp.float32)
    h = jnp.maximum(h + b1_ref[...], 0.0)                       # bias + ReLU (f32)
    y = jnp.dot(h.astype(w2_ref.dtype), w2_ref[...],
                preferred_element_type=jnp.float32)
    o_ref[...] = (y + b2_ref[...] + x.astype(jnp.float32)).astype(o_ref.dtype)


def _ffn_ktiled_kernel(x_ref, w1_ref, b1_ref, w2_ref, b2_ref, o_ref, acc_ref):
    """K-tiled path for large hidden sizes.

    Grid = (row_steps, k_steps); k tiles the intermediate hidden dim.
      x_ref  : (tm, Hd)   resident across k
      w1_ref : (Hd, tk)   column slice of W1^T
      b1_ref : (1, tk)
      w2_ref : (tk, Hd)   row slice of W2^T
      b2_ref : (1, Hd)
      acc_ref: (tm, Hd) f32 accumulator (scratch)
    """
    k = pl.program_id(1)

    @pl.when(k == 0)
    def _():
        acc_ref[...] = jnp.zeros_like(acc_ref)

    x = x_ref[...]
    h = jnp.dot(x, w1_ref[...], preferred_element_type=jnp.float32)
    h = jnp.maximum(h + b1_ref[...], 0.0)
    acc_ref[...] += jnp.dot(h.astype(w2_ref.dtype), w2_ref[...],
                            preferred_element_type=jnp.float32)

    @pl.when(k == pl.num_programs(1) - 1)
    def _():
        o_ref[...] = (acc_ref[...] + b2_ref[...]
                      + x.astype(jnp.float32)).astype(o_ref.dtype)


# ---------------------------------------------------------------------------
# VMEM budgeting / tile selection
# ---------------------------------------------------------------------------
def _vmem_resident_bytes(tm, hd, itemsize):
    io = 2 * 2 * tm * hd * itemsize          # x + out, double-buffered
    w = 2 * 2 * hd * hd * itemsize           # two resident weights (2 buffers each)
    b = 2 * 2 * 8 * hd * 4                   # biases, sublane-padded
    tmp = 2 * tm * hd * 4                    # f32 intermediates (h, y)
    return io + w + b + tmp


def _vmem_ktiled_bytes(tm, hd, tk, itemsize):
    io = 2 * 2 * tm * hd * itemsize          # x + out, double-buffered
    w = 2 * 2 * hd * tk * itemsize           # streamed W1^T/W2^T slices
    b = 2 * (2 * 8 * tk + 8 * hd) * 4
    acc = tm * hd * 4                        # f32 accumulator scratch
    tmp = tm * tk * 4                        # f32 h intermediate
    return io + w + b + acc + tmp


def _choose_tm(n_rows, hd, itemsize, budget, est_fn,
               target_tile_bytes=2 * 1024 * 1024, max_tm=8192):
    # Big enough to amortize per-step pipeline overhead (~0.35us/step).
    tm = _round_up(_cdiv(target_tile_bytes, max(hd * itemsize, 1)), 256)
    tm = max(256, min(tm, max_tm))
    tm = min(tm, _round_up(n_rows, 256))
    if n_rows > 512:  # keep >=2 grid steps so megacore can split the row axis
        tm = min(tm, _round_up(_cdiv(n_rows, 2), 256))
    while tm > 256 and est_fn(tm) > budget:
        tm -= 256
    return max(tm, 256)


# ---------------------------------------------------------------------------
# Public wrapper
# ---------------------------------------------------------------------------
def pointwise_feedforward(x, w1, b1, w2, b2, *, force_ktiled=False, k_tile=512):
    """x: (B, L, H).  w1, w2: (H_out, H_in) conv weights (kernel dim squeezed).
    b1, b2: (H,).  Returns (B, L, H) = conv2(relu(conv1(x))) + x."""
    B, L, H = x.shape
    dtype = x.dtype
    itemsize = jnp.dtype(dtype).itemsize
    n_rows = B * L

    vmem_cap = _vmem_capacity_bytes()
    budget = int(vmem_cap * 0.70)            # headroom for Mosaic internal scratch
    vmem_limit = max(int(vmem_cap * 0.80), 32 * 1024 * 1024)

    # ---- layout: pack positions into lanes when H is a small divisor of 128 ----
    pack = 1
    if H < 128 and 128 % H == 0 and n_rows % (128 // H) == 0:
        pack = 128 // H

    if pack > 1:
        Hd = H * pack                                    # == 128, lane-dense
        R = n_rows // pack
        x2d = x.reshape(R, Hd)                           # free row-major reshape
        eye = jnp.eye(pack, dtype=dtype)
        w1t = jnp.kron(eye, jnp.transpose(w1).astype(dtype))   # block-diag W1^T
        w2t = jnp.kron(eye, jnp.transpose(w2).astype(dtype))   # block-diag W2^T
        b1r = jnp.tile(b1.astype(jnp.float32), pack).reshape(1, Hd)
        b2r = jnp.tile(b2.astype(jnp.float32), pack).reshape(1, Hd)
    else:
        Hd = H
        R = n_rows
        x2d = x.reshape(R, Hd)                           # free reshape, no padding
        w1t = jnp.transpose(w1).astype(dtype)            # (H_in, H_out)
        w2t = jnp.transpose(w2).astype(dtype)
        b1r = b1.astype(jnp.float32).reshape(1, Hd)
        b2r = b2.astype(jnp.float32).reshape(1, Hd)

    # ---- path selection: stream weight slices when resident weights are big ----
    resident_w_bytes = 2 * 2 * Hd * Hd * itemsize
    use_ktiled = (Hd % 128 == 0) and (force_ktiled or resident_w_bytes > budget // 4)

    cost = pl.CostEstimate(
        flops=4 * n_rows * H * H,                        # two matmuls, 2 flops/MAC
        transcendentals=0,
        bytes_accessed=(2 * R * Hd + 2 * Hd * Hd) * itemsize,
    )

    if not use_ktiled:
        tm = _choose_tm(R, Hd, itemsize, budget,
                        lambda t: _vmem_resident_bytes(t, Hd, itemsize))
        out2d = pl.pallas_call(
            _ffn_kernel,
            out_shape=jax.ShapeDtypeStruct((R, Hd), dtype),
            grid_spec=pltpu.PrefetchScalarGridSpec(
                num_scalar_prefetch=0,
                grid=(_cdiv(R, tm),),
                in_specs=[
                    pl.BlockSpec((tm, Hd), lambda i: (i, 0)),   # x tile
                    pl.BlockSpec((Hd, Hd), lambda i: (0, 0)),   # W1^T (resident)
                    pl.BlockSpec((1, Hd), lambda i: (0, 0)),    # b1
                    pl.BlockSpec((Hd, Hd), lambda i: (0, 0)),   # W2^T (resident)
                    pl.BlockSpec((1, Hd), lambda i: (0, 0)),    # b2
                ],
                out_specs=pl.BlockSpec((tm, Hd), lambda i: (i, 0)),
            ),
            compiler_params=pltpu.CompilerParams(
                dimension_semantics=("parallel",),
                vmem_limit_bytes=vmem_limit,
            ),
            cost_estimate=cost,
        )(x2d, w1t, b1r, w2t, b2r)
    else:
        # tk must divide Hd exactly (cross-K reduction: no masked garbage allowed).
        tk = 128
        for cand in (1024, 512, 256, 128):
            if cand <= k_tile and Hd % cand == 0:
                tk = cand
                break
        tm = _choose_tm(R, Hd, itemsize, budget,
                        lambda t: _vmem_ktiled_bytes(t, Hd, tk, itemsize))
        out2d = pl.pallas_call(
            _ffn_ktiled_kernel,
            out_shape=jax.ShapeDtypeStruct((R, Hd), dtype),
            grid_spec=pltpu.PrefetchScalarGridSpec(
                num_scalar_prefetch=0,
                grid=(_cdiv(R, tm), Hd // tk),
                in_specs=[
                    pl.BlockSpec((tm, Hd), lambda i, k: (i, 0)),  # x (resident over k)
                    pl.BlockSpec((Hd, tk), lambda i, k: (0, k)),  # W1^T column slice
                    pl.BlockSpec((1, tk), lambda i, k: (0, k)),   # b1 slice
                    pl.BlockSpec((tk, Hd), lambda i, k: (k, 0)),  # W2^T row slice
                    pl.BlockSpec((1, Hd), lambda i, k: (0, 0)),   # b2
                ],
                out_specs=pl.BlockSpec((tm, Hd), lambda i, k: (i, 0)),
                scratch_shapes=[pltpu.VMEM((tm, Hd), jnp.float32)],
            ),
            compiler_params=pltpu.CompilerParams(
                dimension_semantics=("parallel", "arbitrary"),
                vmem_limit_bytes=vmem_limit,
            ),
            cost_estimate=cost,
        )(x2d, w1t, b1r, w2t, b2r)

    return out2d.reshape(B, L, H)


def _reference(x, w1, b1, w2, b2):
    h = jnp.maximum(jnp.einsum("blh,oh->blo", x, w1) + b1, 0.0)
    y = jnp.einsum("blh,oh->blo", h, w2) + b2
    return y + x


if __name__ == "__main__":
    key = jax.random.PRNGKey(0)

    # --- test 1: SASRec-scale small hidden (packed lane-dense path) ---
    B, L, H = 2, 8, 32
    kx, k1, kb1, k2, kb2, key = jax.random.split(key, 6)
    x = jax.random.normal(kx, (B, L, H), dtype=jnp.float32)
    w1 = jax.random.normal(k1, (H, H), dtype=jnp.float32) * (1.0 / jnp.sqrt(H))
    b1 = jax.random.normal(kb1, (H,), dtype=jnp.float32) * 0.1
    w2 = jax.random.normal(k2, (H, H), dtype=jnp.float32) * (1.0 / jnp.sqrt(H))
    b2 = jax.random.normal(kb2, (H,), dtype=jnp.float32) * 0.1

    out = jax.block_until_ready(pointwise_feedforward(x, w1, b1, w2, b2))
    ref = _reference(x, w1, b1, w2, b2)
    assert out.shape == (B, L, H)
    assert jnp.allclose(out, ref, atol=1e-4, rtol=1e-4), "packed path mismatch"

    # --- test 2: exercise the K-tiled (large hidden) path at a forced small size ---
    H2 = 256
    kx2, k12, kb12, k22, kb22, key = jax.random.split(key, 6)
    x2 = jax.random.normal(kx2, (B, L, H2), dtype=jnp.float32)
    w1_2 = jax.random.normal(k12, (H2, H2), dtype=jnp.float32) * (1.0 / jnp.sqrt(H2))
    b1_2 = jax.random.normal(kb12, (H2,), dtype=jnp.float32) * 0.1
    w2_2 = jax.random.normal(k22, (H2, H2), dtype=jnp.float32) * (1.0 / jnp.sqrt(H2))
    b2_2 = jax.random.normal(kb22, (H2,), dtype=jnp.float32) * 0.1

    out2 = jax.block_until_ready(
        pointwise_feedforward(x2, w1_2, b1_2, w2_2, b2_2,
                              force_ktiled=True, k_tile=128))
    ref2 = _reference(x2, w1_2, b1_2, w2_2, b2_2)
    assert out2.shape == (B, L, H2)
    assert jnp.allclose(out2, ref2, atol=1e-3, rtol=1e-3), "k-tiled path mismatch"

    print("KERNEL_OK")
</pallas_src>

<mosaic_0001>
module attributes {stable_mosaic.version = 11 : i64} {
  func.func @_ffn_kernel(%arg0: i32, %arg1: memref<256x128xf32, #tpu.memory_space<vmem>>, %arg2: memref<128x128xf32, #tpu.memory_space<vmem>>, %arg3: memref<1x128xf32, #tpu.memory_space<vmem>>, %arg4: memref<128x128xf32, #tpu.memory_space<vmem>>, %arg5: memref<1x128xf32, #tpu.memory_space<vmem>>, %arg6: memref<256x128xf32, #tpu.memory_space<vmem>>) attributes {dimension_semantics = [#tpu.dimension_semantics<parallel>], iteration_bounds = array<i64: 1>, scalar_prefetch = 0 : i64, scratch_operands = 0 : i64, tpu.core_type = #tpu.core_type<tc>, window_params = [{transform_indices = @transform_0, window_bounds = array<i64: 256, 128>}, {pipeline_mode = #tpu.pipeline_mode<synchronous>, transform_indices = @transform_1, window_bounds = array<i64: 128, 128>}, {pipeline_mode = #tpu.pipeline_mode<synchronous>, transform_indices = @transform_2, window_bounds = array<i64: 1, 128>}, {pipeline_mode = #tpu.pipeline_mode<synchronous>, transform_indices = @transform_3, window_bounds = array<i64: 128, 128>}, {pipeline_mode = #tpu.pipeline_mode<synchronous>, transform_indices = @transform_4, window_bounds = array<i64: 1, 128>}, {transform_indices = @transform_5, window_bounds = array<i64: 256, 128>}]} {
    %c0 = arith.constant 0 : index
    %c0_0 = arith.constant 0 : index
    %0 = vector.load %arg1[%c0, %c0_0] : memref<256x128xf32, #tpu.memory_space<vmem>>, vector<256x128xf32>
    %c0_1 = arith.constant 0 : index
    %c0_2 = arith.constant 0 : index
    %1 = vector.load %arg2[%c0_1, %c0_2] : memref<128x128xf32, #tpu.memory_space<vmem>>, vector<128x128xf32>
    %cst = arith.constant dense<0.000000e+00> : vector<256x128xf32>
    %2 = tpu.matmul %0, %1, %cst {dimension_numbers = #tpu.dot_dimension_numbers<[1], [0], [0], [1], [0, 0, 1, 1], [], []>} : vector<256x128xf32>, vector<128x128xf32>, vector<256x128xf32> -> vector<256x128xf32>
    %c0_3 = arith.constant 0 : index
    %c0_4 = arith.constant 0 : index
    %3 = vector.load %arg3[%c0_3, %c0_4] : memref<1x128xf32, #tpu.memory_space<vmem>>, vector<1x128xf32>
    %4 = vector.broadcast %3 : vector<1x128xf32> to vector<256x128xf32>
    %5 = arith.addf %2, %4 : vector<256x128xf32>
    %cst_5 = arith.constant 0.000000e+00 : f32
    %6 = vector.broadcast %cst_5 : f32 to vector<256x128xf32>
    %7 = arith.maximumf %5, %6 : vector<256x128xf32>
    %c0_6 = arith.constant 0 : index
    %c0_7 = arith.constant 0 : index
    %8 = vector.load %arg4[%c0_6, %c0_7] : memref<128x128xf32, #tpu.memory_space<vmem>>, vector<128x128xf32>
    %cst_8 = arith.constant dense<0.000000e+00> : vector<256x128xf32>
    %9 = tpu.matmul %7, %8, %cst_8 {dimension_numbers = #tpu.dot_dimension_numbers<[1], [0], [0], [1], [0, 0, 1, 1], [], []>} : vector<256x128xf32>, vector<128x128xf32>, vector<256x128xf32> -> vector<256x128xf32>
    %c0_9 = arith.constant 0 : index
    %c0_10 = arith.constant 0 : index
    %10 = vector.load %arg5[%c0_9, %c0_10] : memref<1x128xf32, #tpu.memory_space<vmem>>, vector<1x128xf32>
    %11 = vector.broadcast %10 : vector<1x128xf32> to vector<256x128xf32>
    %12 = arith.addf %9, %11 : vector<256x128xf32>
    %13 = arith.addf %12, %0 : vector<256x128xf32>
    %c0_11 = arith.constant 0 : index
    %c0_12 = arith.constant 0 : index
    %14 = vector.load %arg6[%c0_11, %c0_12] : memref<256x128xf32, #tpu.memory_space<vmem>>, vector<256x128xf32>
    tpu.vector_store %arg6[%c0_11, %c0_12], %13 {strides = array<i32>} : memref<256x128xf32, #tpu.memory_space<vmem>>, vector<256x128xf32>,
    return
  }
  func.func @transform_0(%arg0: i32) -> (i32, i32) {
    %c0_i32 = arith.constant 0 : i32
    %c0_i32_0 = arith.constant 0 : i32
    return %arg0, %c0_i32 : i32, i32
  }
  func.func @transform_1(%arg0: i32) -> (i32, i32) {
    %c0_i32 = arith.constant 0 : i32
    %c0_i32_0 = arith.constant 0 : i32
    %c0_i32_1 = arith.constant 0 : i32
    return %c0_i32, %c0_i32_0 : i32, i32
  }
  func.func @transform_2(%arg0: i32) -> (i32, i32) {
    %c0_i32 = arith.constant 0 : i32
    %c0_i32_0 = arith.constant 0 : i32
    %c0_i32_1 = arith.constant 0 : i32
    return %c0_i32, %c0_i32_0 : i32, i32
  }
  func.func @transform_3(%arg0: i32) -> (i32, i32) {
    %c0_i32 = arith.constant 0 : i32
    %c0_i32_0 = arith.constant 0 : i32
    %c0_i32_1 = arith.constant 0 : i32
    return %c0_i32, %c0_i32_0 : i32, i32
  }
  func.func @transform_4(%arg0: i32) -> (i32, i32) {
    %c0_i32 = arith.constant 0 : i32
    %c0_i32_0 = arith.constant 0 : i32
    %c0_i32_1 = arith.constant 0 : i32
    return %c0_i32, %c0_i32_0 : i32, i32
  }
  func.func @transform_5(%arg0: i32) -> (i32, i32) {
    %c0_i32 = arith.constant 0 : i32
    %c0_i32_0 = arith.constant 0 : i32
    return %arg0, %c0_i32 : i32, i32
  }
}

</mosaic_0001>

<bundles_post_ra>
// kernel: tpu_custom_call.1
= control target key start
LH: loop header
LB: loop body
LE: loop exit
PB: predicated region body
PF: predicated region fallthrough
CT: control target
= control target key end

     0   :  { %10 = vsyncpa [#allocation3], 0  ;;  %s1428_s0 = inlined_call_operand.hbm [shape: f32[4,128], index: 0, kind: input, shape index: {}]   ;;  %s1429_s1 = inlined_call_operand.hbm [shape: f32[128,128], index: 1, kind: input, shape index: {}]   ;;  %s1430_s2 = inlined_call_operand.vmem [shape: f32[1,128], index: 2, kind: input, shape index: {}]   ;;  %s1431_s3 = inlined_call_operand.hbm [shape: f32[128,128], index: 3, kind: input, shape index: {}]   ;;  %s1432_s4 = inlined_call_operand.vmem [shape: f32[1,128], index: 4, kind: input, shape index: {}]   ;;  %s1433_s5 = inlined_call_operand.hbm [shape: f32[4,128], index: 5, kind: output, shape index: {}]  }
   0x1   :  { %11 = vsyncpa [#allocation6], 0 }
   0x2   :  { %12 = vsyncpa [#allocation4], 0 }
   0x3   :  { %17 = vsyncadd [#allocation3], 4032  ;;  %s1128_s18 = smov [#allocation5]   ;;  %s1034_s22 = scalar_lea.hbm %s1429_s1, 2048 }
   0x4   :  { %s30_s19 = sshll.u32 %s1128_s18, 4  ;;  %p1035_p0 = scmp.ne.s32.totalorder %s1429_s1, %s1034_s22  ;;  %s31_s19 = int_to_ptr.vmem [resolvable:$true] %s30_s19 }
   0x5   :  { %p1038_p1 = scmp.lt.u32.totalorder %s1034_s22, %s1429_s1 }
   0x7   :  { %p1040_p2 = pnand %p1038_p1, %p1035_p0 }
   0x9   :  { %1043 = shalt.err (!%p1040_p2)
}
   0xa   :  { %s1044_s27 = scalar_lea.vmem %s31_s19, 2048  ;;  %p1049_p4 = scmp.lt.s32.totalorder %s31_s19, %s31_s19 }
   0xb   :  { %p1045_p3 = scmp.ne.s32.totalorder %s31_s19, %s1044_s27  ;;  %p1050_p5 = scmp.lt.s32.totalorder %s1044_s27, %s1044_s27 }
   0xd   :  { %p1051_p6 = por %p1050_p5, %p1049_p4 }
   0xf   :  { %p1052_p7 = pnand %p1051_p6, %p1045_p3 }
  0x11   :  { %1055 = shalt.err (!%p1052_p7)
}
  0x12   :  { %s1129_s28 = smov 128   ;;  %s1130_s29 = smov 8  }
  0x13   :  { %36 = dma.hbm_to_vmem [thread:$0]  %s1429_s1, 2048, %s31_s19, [#allocation6], %s1129_s28, %s1129_s28, %s1130_s29  }
  0x14   :  { %s1131_s7 = smov [#allocation2]   ;;  %s1056_s11 = scalar_lea.hbm %s1428_s0, 64 }
  0x15   :  { %s18_s8 = sshll.u32 %s1131_s7, 4  ;;  %p1057_p8 = scmp.ne.s32.totalorder %s1428_s0, %s1056_s11  ;;  %s19_s8 = int_to_ptr.vmem [resolvable:$true] %s18_s8 }
  0x16   :  { %p1060_p9 = scmp.lt.u32.totalorder %s1056_s11, %s1428_s0 }
  0x18   :  { %p1062_p10 = pnand %p1060_p9, %p1057_p8 }
  0x1a   :  { %1065 = shalt.err (!%p1062_p10)
}
  0x1b   :  { %s1066_s16 = scalar_lea.vmem %s19_s8, 64  ;;  %s1070_s1 = scalar_lea.vmem %s19_s8, 4096 }
  0x1c   :  { %p1067_p11 = scmp.ne.s32.totalorder %s19_s8, %s1066_s16  ;;  %p1071_p12 = scmp.lt.s32.totalorder %s19_s8, %s19_s8 }
  0x1d   :  { %p1072_p13 = scmp.lt.s32.totalorder %s1070_s1, %s1066_s16 }
  0x1f   :  { %p1073_p0 = por %p1072_p13, %p1071_p12 }
  0x21   :  { %p1074_p1 = pnand %p1073_p0, %p1067_p11 }
  0x23   :  { %1077 = shalt.err (!%p1074_p1)
}
  0x24   :  { %s1132_s17 = smov 64   ;;  %s1133_s18 = smov 4  }
  0x25   :  { %24 = dma.hbm_to_vmem [thread:$0]  %s1428_s0, 64, %s19_s8, [#allocation3], %s1132_s17, %s1132_s17, %s1133_s18  }
  0x26   :  { %s1134_s21 = smov [#allocation7]   ;;  %s1078_s25 = scalar_lea.hbm %s1431_s3, 2048 }
  0x27   :  { %s44_s22 = sshll.u32 %s1134_s21, 4  ;;  %p1079_p2 = scmp.ne.s32.totalorder %s1431_s3, %s1078_s25  ;;  %s45_s22 = int_to_ptr.vmem [resolvable:$true] %s44_s22 }
  0x28   :  { %p1082_p3 = scmp.lt.u32.totalorder %s1078_s25, %s1431_s3 }
  0x2a   :  { %p1084_p4 = pnand %p1082_p3, %p1079_p2 }
  0x2c   :  { %1087 = shalt.err (!%p1084_p4)
}
  0x2d   :  { %s1088_s7 = scalar_lea.vmem %s45_s22, 2048  ;;  %p1093_p6 = scmp.lt.s32.totalorder %s45_s22, %s45_s22 }
  0x2e   :  { %p1089_p5 = scmp.ne.s32.totalorder %s45_s22, %s1088_s7  ;;  %p1094_p7 = scmp.lt.s32.totalorder %s1088_s7, %s1088_s7 }
  0x30   :  { %p1095_p8 = por %p1094_p7, %p1093_p6 }
  0x32   :  { %p1096_p9 = pnand %p1095_p8, %p1089_p5 }
  0x34   :  { %1099 = shalt.err (!%p1096_p9)
}
  0x35   :  { %50 = dma.hbm_to_vmem [thread:$0]  %s1431_s3, 2048, %s45_s22, [#allocation6], %s1129_s28, %s1129_s28, %s1130_s29  }
  0x36   :  { %1122 = dma.done.wait [#allocation3], 4096  }
  0x37   :  { %1123 = vsyncadd [#allocation3], 4294963200 }
  0x38   :  { %1124 = dma.done.wait [#allocation6], 4096  }
  0x39   :  { %1125 = vsyncadd [#allocation6], 4294963200  ;;  %v94_v0 = vld [vmem:[#allocation5] sm:$0xff]  ;;  %v95_v1 = vld [vmem:[#allocation5 + $0x8] sm:$0xff] }
  0x3a   :  { %v96_v2 = vld [vmem:[#allocation5 + $0x10] sm:$0xff]  ;;  %v962_v3 = vpack.c.bf16 %v95_v1, %v94_v0  ;;  %v97_v4 = vld [vmem:[#allocation5 + $0x18] sm:$0xff]  ;;  %v98_v6 = vld [vmem:[#allocation5 + $0x20] sm:$0xff] }
  0x3b   :  { %v966_v5 = vpack.c.bf16 %v97_v4, %v96_v2  ;;  %v99_v7 = vld [vmem:[#allocation5 + $0x28] sm:$0xff]  ;;  %v1211_v9 = vld [vmem:[#allocation2] sm:$0xff]  ;;  %v100_v10 = vld [vmem:[#allocation5 + $0x30] sm:$0xff] }
  0x3c   :  { %963 = vmatprep.subr.bf16.mxu0 %v962_v3  ;;  %v970_v8 = vpack.c.bf16 %v99_v7, %v98_v6  ;;  %v101_v11 = vld [vmem:[#allocation5 + $0x38] sm:$0xff]  ;;  %834 = vmatprep.mubr.f32.mxu0 %v1211_v9  ;;  %v102_v13 = vld [vmem:[#allocation5 + $0x40] sm:$0xff]  ;;  %v103_v14 = vld [vmem:[#allocation5 + $0x48] sm:$0xff] }
  0x3d   :  { %965 = vmatpush3.bf16.msra.mxu0 %v962_v3  ;;  %v974_v12 = vpack.c.bf16 %v101_v11, %v100_v10  ;;  %v978_v15 = vpack.c.bf16 %v103_v14, %v102_v13  ;;  %v104_v16 = vld [vmem:[#allocation5 + $0x50] sm:$0xff]  ;;  %v105_v17 = vld [vmem:[#allocation5 + $0x58] sm:$0xff]  ;;  %v374_v18 = vld [vmem:[#allocation7] sm:$0xff] }
  0x3e   :  { %967 = vmatprep.subr.bf16.mxu0 %v966_v5  ;;  %v375_v19 = vld [vmem:[#allocation7 + $0x8] sm:$0xff]  ;;  %v376_v20 = vld [vmem:[#allocation7 + $0x10] sm:$0xff]  ;;  %v982_v21 = vpack.c.bf16 %v105_v17, %v104_v16  ;;  %v106_v22 = vld [vmem:[#allocation5 + $0x60] sm:$0xff] }
  0x3f   :  { %v994_v23 = vpack.c.bf16 %v375_v19, %v374_v18  ;;  %v377_v24 = vld [vmem:[#allocation7 + $0x18] sm:$0xff]  ;;  %v107_v25 = vld [vmem:[#allocation5 + $0x68] sm:$0xff]  ;;  %v378_v27 = vld [vmem:[#allocation7 + $0x20] sm:$0xff] }
  0x40   :  { %v998_v26 = vpack.c.bf16 %v377_v24, %v376_v20  ;;  %v379_v28 = vld [vmem:[#allocation7 + $0x28] sm:$0xff]  ;;  %v986_v29 = vpack.c.bf16 %v107_v25, %v106_v22  ;;  %v108_v30 = vld [vmem:[#allocation5 + $0x70] sm:$0xff]  ;;  %v109_v32 = vld [vmem:[#allocation5 + $0x78] sm:$0xff] }
  0x41   :  { %969 = vmatpush3.bf16.msra.mxu0 %v966_v5  ;;  %995 = vmatprep.subr.bf16.mxu1 %v994_v23  ;;  %v1002_v31 = vpack.c.bf16 %v379_v28, %v378_v27  ;;  %v380_v33 = vld [vmem:[#allocation7 + $0x30] sm:$0xff]  ;;  %v381_v34 = vld [vmem:[#allocation7 + $0x38] sm:$0xff]  ;;  %v990_v35 = vpack.c.bf16 %v109_v32, %v108_v30  ;;  %v382_v37 = vld [vmem:[#allocation7 + $0x40] sm:$0xff] }
  0x42   :  { %971 = vmatprep.subr.bf16.mxu0 %v970_v8  ;;  %997 = vmatpush3.bf16.msra.mxu1 %v994_v23  ;;  %v1006_v36 = vpack.c.bf16 %v381_v34, %v380_v33  ;;  %v383_v38 = vld [vmem:[#allocation7 + $0x48] sm:$0xff]  ;;  %v384_v40 = vld [vmem:[#allocation7 + $0x50] sm:$0xff]  ;;  %v385_v41 = vld [vmem:[#allocation7 + $0x58] sm:$0xff] }
  0x43   :  { %999 = vmatprep.subr.bf16.mxu1 %v998_v26  ;;  %v1010_v39 = vpack.c.bf16 %v383_v38, %v382_v37  ;;  %v1214_v42 = vld [vmem:[#allocation2 + $0x8] sm:$0xff]  ;;  %v1216_v43 = vld [vmem:[#allocation2 + $0x10] sm:$0xff]  ;;  %v1014_v44 = vpack.c.bf16 %v385_v41, %v384_v40  ;;  %v386_v45 = vld [vmem:[#allocation7 + $0x60] sm:$0xff] }
  0x44   :  { %v387_v46 = vld [vmem:[#allocation7 + $0x68] sm:$0xff]  ;;  %v1220_v47 = vld [vmem:[#allocation2 + $0x18] sm:$0xff]  ;;  %v1222_v48 = vld [vmem:[#allocation2 + $0x20] sm:$0xff] }
  0x45   :  { %973 = vmatpush3.bf16.msra.mxu0 %v970_v8  ;;  %v1018_v49 = vpack.c.bf16 %v387_v46, %v386_v45  ;;  %v1226_v50 = vld [vmem:[#allocation2 + $0x28] sm:$0xff]  ;;  %v1228_v51 = vld [vmem:[#allocation2 + $0x30] sm:$0xff]  ;;  %v1232_v52 = vld [vmem:[#allocation2 + $0x38] sm:$0xff] }
  0x46   :  { %975 = vmatprep.subr.bf16.mxu0 %v974_v12  ;;  %1001 = vmatpush3.bf16.msra.mxu1 %v998_v26  ;;  %v1234_v53 = vld [vmem:[#allocation2 + $0x40] sm:$0xff]  ;;  %v1238_v54 = vld [vmem:[#allocation2 + $0x48] sm:$0xff]  ;;  %v1240_v55 = vld [vmem:[#allocation2 + $0x50] sm:$0xff] }
  0x47   :  { %1003 = vmatprep.subr.bf16.mxu1 %v1002_v31  ;;  %v1244_v56 = vld [vmem:[#allocation2 + $0x58] sm:$0xff]  ;;  %v1246_v57 = vld [vmem:[#allocation2 + $0x60] sm:$0xff]  ;;  %v1250_v58 = vld [vmem:[#allocation2 + $0x68] sm:$0xff] }
  0x48   :  { %v1252_v59 = vld [vmem:[#allocation2 + $0x70] sm:$0xff]  ;;  %v1256_v60 = vld [vmem:[#allocation2 + $0x78] sm:$0xff]  ;;  %v1258_v61 = vld [vmem:[#allocation2 + $0x80] sm:$0xff] }
  0x49   :  { %977 = vmatpush3.bf16.msra.mxu0 %v974_v12  ;;  %v1262_v62 = vld [vmem:[#allocation2 + $0x88] sm:$0xff]  ;;  %v1264_v63 = vld [vmem:[#allocation2 + $0x90] sm:$0xff]  ;;  %v1268_v0 = vld [vmem:[#allocation2 + $0x98] sm:$0xff] }
  0x4a   :  { %979 = vmatprep.subr.bf16.mxu0 %v978_v15  ;;  %1005 = vmatpush3.bf16.msra.mxu1 %v1002_v31  ;;  %v1270_v1 = vld [vmem:[#allocation2 + $0xa0] sm:$0xff]  ;;  %v1274_v2 = vld [vmem:[#allocation2 + $0xa8] sm:$0xff]  ;;  %v1276_v3 = vld [vmem:[#allocation2 + $0xb0] sm:$0xff] }
  0x4b   :  { %1007 = vmatprep.subr.bf16.mxu1 %v1006_v36  ;;  %v1280_v4 = vld [vmem:[#allocation2 + $0xb8] sm:$0xff]  ;;  %v1282_v5 = vld [vmem:[#allocation2 + $0xc0] sm:$0xff]  ;;  %v1286_v6 = vld [vmem:[#allocation2 + $0xc8] sm:$0xff] }
  0x4c   :  { %v1288_v7 = vld [vmem:[#allocation2 + $0xd0] sm:$0xff]  ;;  %v1292_v8 = vld [vmem:[#allocation2 + $0xd8] sm:$0xff]  ;;  %v1294_v10 = vld [vmem:[#allocation2 + $0xe0] sm:$0xff] }
  0x4d   :  { %981 = vmatpush3.bf16.msra.mxu0 %v978_v15  ;;  %v1298_v11 = vld [vmem:[#allocation2 + $0xe8] sm:$0xff]  ;;  %v1300_v12 = vld [vmem:[#allocation2 + $0xf0] sm:$0xff]  ;;  %v1304_v13 = vld [vmem:[#allocation2 + $0xf8] sm:$0xff] }
  0x4e   :  { %983 = vmatprep.subr.bf16.mxu0 %v982_v21  ;;  %1009 = vmatpush3.bf16.msra.mxu1 %v1006_v36  ;;  %v388_v14 = vld [vmem:[#allocation7 + $0x70] sm:$0xff]  ;;  %v389_v15 = vld [vmem:[#allocation7 + $0x78] sm:$0xff]  ;;  %v1310_v17 = vld [vmem:[%s1430_s2] ss:$0 sm:$0xff] }
  0x4f   :  { %1011 = vmatprep.subr.bf16.mxu1 %v1010_v39  ;;  %v1022_v16 = vpack.c.bf16 %v389_v15, %v388_v14 }
  0x51   :  { %985 = vmatpush3.bf16.msra.mxu0 %v982_v21 }
  0x52   :  { %987 = vmatprep.subr.bf16.mxu0 %v986_v29  ;;  %1013 = vmatpush3.bf16.msra.mxu1 %v1010_v39 }
  0x53   :  { %1015 = vmatprep.subr.bf16.mxu1 %v1014_v44 }
  0x55   :  { %989 = vmatpush3.bf16.msra.mxu0 %v986_v29 }
  0x56   :  { %991 = vmatprep.subr.bf16.mxu0 %v990_v35  ;;  %1017 = vmatpush3.bf16.msra.mxu1 %v1014_v44 }
  0x57   :  { %1019 = vmatprep.subr.bf16.mxu1 %v1018_v49 }
  0x59   :  { %993 = vmatpush3.bf16.msra.mxu0 %v990_v35 }
  0x5a   :  { %1021 = vmatpush3.bf16.msra.mxu1 %v1018_v49 }
  0x5b   :  { %1023 = vmatprep.subr.bf16.mxu1 %v1022_v16 }
  0x5c   :  { %835 = vmatmul.mubr.f32.vlgmr.msra.gmra.mrb[0].mxu0 %v1214_v42 }
  0x5d   :  { %837 = vmatprep.mubr.f32.mxu0 %v1216_v43 }
  0x5e   :  { %1025 = vmatpush3.bf16.msra.mxu1 %v1022_v16 }
  0x60   :  { %838 = vmatmul.mubr.f32.gmra.mrb[2].mxu0 %v1220_v47 }
  0x61   :  { %840 = vmatprep.mubr.f32.mxu0 %v1222_v48 }
  0x64   :  { %841 = vmatmul.mubr.f32.gmra.mrb[4].mxu0 %v1226_v50 }
  0x65   :  { %843 = vmatprep.mubr.f32.mxu0 %v1228_v51 }
  0x68   :  { %844 = vmatmul.mubr.f32.gmra.mrb[6].mxu0 %v1232_v52 }
  0x69   :  { %846 = vmatprep.mubr.f32.mxu0 %v1234_v53 }
  0x6c   :  { %847 = vmatmul.mubr.f32.gmra.mrb[8].mxu0 %v1238_v54 }
  0x6d   :  { %849 = vmatprep.mubr.f32.mxu0 %v1240_v55 }
  0x70   :  { %850 = vmatmul.mubr.f32.gmra.mrb[10].mxu0 %v1244_v56 }
  0x71   :  { %852 = vmatprep.mubr.f32.mxu0 %v1246_v57 }
  0x74   :  { %853 = vmatmul.mubr.f32.gmra.mrb[12].mxu0 %v1250_v58 }
  0x75   :  { %855 = vmatprep.mubr.f32.mxu0 %v1252_v59 }
  0x78   :  { %856 = vmatmul.mubr.f32.gmra.mrb[14].mxu0 %v1256_v60 }
  0x79   :  { %858 = vmatprep.mubr.f32.mxu0 %v1258_v61 }
  0x7c   :  { %859 = vmatmul.mubr.f32.gmra.mrb[16].mxu0 %v1262_v62 }
  0x7d   :  { %861 = vmatprep.mubr.f32.mxu0 %v1264_v63 }
  0x80   :  { %862 = vmatmul.mubr.f32.gmra.mrb[18].mxu0 %v1268_v0 }
  0x81   :  { %864 = vmatprep.mubr.f32.mxu0 %v1270_v1 }
  0x84   :  { %865 = vmatmul.mubr.f32.gmra.mrb[20].mxu0 %v1274_v2 }
  0x85   :  { %867 = vmatprep.mubr.f32.mxu0 %v1276_v3 }
  0x88   :  { %868 = vmatmul.mubr.f32.gmra.mrb[22].mxu0 %v1280_v4 }
  0x89   :  { %870 = vmatprep.mubr.f32.mxu0 %v1282_v5 }
  0x8c   :  { %871 = vmatmul.mubr.f32.gmra.mrb[24].mxu0 %v1286_v6 }
  0x8d   :  { %873 = vmatprep.mubr.f32.mxu0 %v1288_v7 }
  0x90   :  { %874 = vmatmul.mubr.f32.gmra.mrb[26].mxu0 %v1292_v8 }
  0x91   :  { %876 = vmatprep.mubr.f32.mxu0 %v1294_v10 }
  0x94   :  { %877 = vmatmul.mubr.f32.gmra.mrb[28].mxu0 %v1298_v11 }
  0x95   :  { %879 = vmatprep.mubr.f32.mxu0 %v1300_v12 }
  0x98   :  { %880 = vmatmul.mubr.f32.gmra.mrb[30].mxu0 %v1304_v13 }
 0x12f   :  { %v836_v18 = vpop.f32.mrb[0].mxu0 }
 0x130   :  { %v189_v19 = vadd.f32 %v836_v18, %v1310_v17  ;;  %v183_v20 = vpop.f32.mrb[1].mxu0 }
 0x131   :  { %v184_v21 = vadd.f32 %v1310_v17, %v183_v20 }
 0x132   :  { %v343_v24 = vmax.f32 %v189_v19, 0.0 }
 0x133   :  { %v839_v22 = vpop.f32.mrb[2].mxu0  ;;  %v342_v23 = vmax.f32 %v184_v21, 0.0 }
 0x134   :  { %v199_v25 = vadd.f32 %v839_v22, %v1310_v17  ;;  %v193_v26 = vpop.f32.mrb[3].mxu0 }
 0x135   :  { %v194_v27 = vadd.f32 %v1310_v17, %v193_v26  ;;  %914 = vmatprep.mubr.f32.mxu1 %v342_v23 }
 0x136   :  { %915 = vmatmul.mubr.f32.vlgmr.msra.gmra.mrb[0].mxu1 %v343_v24  ;;  %v345_v30 = vmax.f32 %v199_v25, 0.0 }
 0x137   :  { %v344_v28 = vmax.f32 %v194_v27, 0.0  ;;  %v842_v29 = vpop.f32.mrb[4].mxu0 }
 0x138   :  { %v209_v31 = vadd.f32 %v842_v29, %v1310_v17  ;;  %v203_v32 = vpop.f32.mrb[5].mxu0 }
 0x139   :  { %v204_v33 = vadd.f32 %v1310_v17, %v203_v32  ;;  %917 = vmatprep.mubr.f32.mxu1 %v344_v28 }
 0x13a   :  { %918 = vmatmul.mubr.f32.gmra.mrb[2].mxu1 %v345_v30  ;;  %v347_v36 = vmax.f32 %v209_v31, 0.0 }
 0x13b   :  { %v346_v34 = vmax.f32 %v204_v33, 0.0  ;;  %v845_v35 = vpop.f32.mrb[6].mxu0 }
 0x13c   :  { %v219_v37 = vadd.f32 %v845_v35, %v1310_v17  ;;  %v213_v38 = vpop.f32.mrb[7].mxu0 }
 0x13d   :  { %v214_v39 = vadd.f32 %v1310_v17, %v213_v38  ;;  %920 = vmatprep.mubr.f32.mxu1 %v346_v34 }
 0x13e   :  { %921 = vmatmul.mubr.f32.gmra.mrb[4].mxu1 %v347_v36  ;;  %v349_v44 = vmax.f32 %v219_v37, 0.0 }
 0x13f   :  { %v348_v40 = vmax.f32 %v214_v39, 0.0  ;;  %v848_v41 = vpop.f32.mrb[8].mxu0 }
 0x140   :  { %v229_v45 = vadd.f32 %v848_v41, %v1310_v17  ;;  %v223_v46 = vpop.f32.mrb[9].mxu0 }
 0x141   :  { %v224_v49 = vadd.f32 %v1310_v17, %v223_v46  ;;  %923 = vmatprep.mubr.f32.mxu1 %v348_v40 }
 0x142   :  { %924 = vmatmul.mubr.f32.gmra.mrb[6].mxu1 %v349_v44  ;;  %v351_v16 = vmax.f32 %v229_v45, 0.0 }
 0x143   :  { %v350_v14 = vmax.f32 %v224_v49, 0.0  ;;  %v851_v15 = vpop.f32.mrb[10].mxu0 }
 0x144   :  { %v239_v18 = vadd.f32 %v851_v15, %v1310_v17  ;;  %v233_v19 = vpop.f32.mrb[11].mxu0 }
 0x145   :  { %v234_v20 = vadd.f32 %v1310_v17, %v233_v19  ;;  %926 = vmatprep.mubr.f32.mxu1 %v350_v14 }
 0x146   :  { %927 = vmatmul.mubr.f32.gmra.mrb[8].mxu1 %v351_v16  ;;  %v353_v23 = vmax.f32 %v239_v18, 0.0 }
 0x147   :  { %v352_v21 = vmax.f32 %v234_v20, 0.0  ;;  %v854_v22 = vpop.f32.mrb[12].mxu0 }
 0x148   :  { %v249_v24 = vadd.f32 %v854_v22, %v1310_v17  ;;  %v243_v25 = vpop.f32.mrb[13].mxu0 }
 0x149   :  { %v244_v26 = vadd.f32 %v1310_v17, %v243_v25  ;;  %929 = vmatprep.mubr.f32.mxu1 %v352_v21 }
 0x14a   :  { %930 = vmatmul.mubr.f32.gmra.mrb[10].mxu1 %v353_v23  ;;  %v355_v29 = vmax.f32 %v249_v24, 0.0 }
 0x14b   :  { %v354_v27 = vmax.f32 %v244_v26, 0.0  ;;  %v857_v28 = vpop.f32.mrb[14].mxu0 }
 0x14c   :  { %v259_v30 = vadd.f32 %v857_v28, %v1310_v17  ;;  %v253_v31 = vpop.f32.mrb[15].mxu0 }
 0x14d   :  { %v254_v32 = vadd.f32 %v1310_v17, %v253_v31  ;;  %932 = vmatprep.mubr.f32.mxu1 %v354_v27 }
 0x14e   :  { %933 = vmatmul.mubr.f32.gmra.mrb[12].mxu1 %v355_v29  ;;  %v357_v35 = vmax.f32 %v259_v30, 0.0 }
 0x14f   :  { %v356_v33 = vmax.f32 %v254_v32, 0.0  ;;  %v860_v34 = vpop.f32.mrb[16].mxu0 }
 0x150   :  { %v269_v36 = vadd.f32 %v860_v34, %v1310_v17  ;;  %v263_v37 = vpop.f32.mrb[17].mxu0 }
 0x151   :  { %v264_v38 = vadd.f32 %v1310_v17, %v263_v37  ;;  %935 = vmatprep.mubr.f32.mxu1 %v356_v33 }
 0x152   :  { %936 = vmatmul.mubr.f32.gmra.mrb[14].mxu1 %v357_v35  ;;  %v359_v41 = vmax.f32 %v269_v36, 0.0 }
 0x153   :  { %v358_v39 = vmax.f32 %v264_v38, 0.0  ;;  %v863_v40 = vpop.f32.mrb[18].mxu0 }
 0x154   :  { %v279_v44 = vadd.f32 %v863_v40, %v1310_v17  ;;  %v273_v45 = vpop.f32.mrb[19].mxu0 }
 0x155   :  { %v274_v46 = vadd.f32 %v1310_v17, %v273_v45  ;;  %938 = vmatprep.mubr.f32.mxu1 %v358_v39 }
 0x156   :  { %939 = vmatmul.mubr.f32.gmra.mrb[16].mxu1 %v359_v41  ;;  %v361_v15 = vmax.f32 %v279_v44, 0.0 }
 0x157   :  { %v360_v49 = vmax.f32 %v274_v46, 0.0  ;;  %v866_v14 = vpop.f32.mrb[20].mxu0 }
 0x158   :  { %v289_v16 = vadd.f32 %v866_v14, %v1310_v17  ;;  %v283_v18 = vpop.f32.mrb[21].mxu0 }
 0x159   :  { %v284_v19 = vadd.f32 %v1310_v17, %v283_v18  ;;  %941 = vmatprep.mubr.f32.mxu1 %v360_v49 }
 0x15a   :  { %942 = vmatmul.mubr.f32.gmra.mrb[18].mxu1 %v361_v15  ;;  %v363_v22 = vmax.f32 %v289_v16, 0.0 }
 0x15b   :  { %v362_v20 = vmax.f32 %v284_v19, 0.0  ;;  %v869_v21 = vpop.f32.mrb[22].mxu0 }
 0x15c   :  { %v299_v23 = vadd.f32 %v869_v21, %v1310_v17  ;;  %v293_v24 = vpop.f32.mrb[23].mxu0  ;;  %v1347_v21 = vld [vmem:[%s1432_s4] ss:$0 sm:$0xff] }
 0x15d   :  { %v294_v25 = vadd.f32 %v1310_v17, %v293_v24  ;;  %944 = vmatprep.mubr.f32.mxu1 %v362_v20 }
 0x15e   :  { %945 = vmatmul.mubr.f32.gmra.mrb[20].mxu1 %v363_v22  ;;  %v365_v28 = vmax.f32 %v299_v23, 0.0 }
 0x15f   :  { %v364_v26 = vmax.f32 %v294_v25, 0.0  ;;  %v872_v27 = vpop.f32.mrb[24].mxu0 }
 0x160   :  { %v309_v29 = vadd.f32 %v872_v27, %v1310_v17  ;;  %v303_v30 = vpop.f32.mrb[25].mxu0 }
 0x161   :  { %v304_v31 = vadd.f32 %v1310_v17, %v303_v30  ;;  %947 = vmatprep.mubr.f32.mxu1 %v364_v26 }
 0x162   :  { %948 = vmatmul.mubr.f32.gmra.mrb[22].mxu1 %v365_v28  ;;  %v367_v34 = vmax.f32 %v309_v29, 0.0 }
 0x163   :  { %v366_v32 = vmax.f32 %v304_v31, 0.0  ;;  %v875_v33 = vpop.f32.mrb[26].mxu0 }
 0x164   :  { %v319_v35 = vadd.f32 %v875_v33, %v1310_v17  ;;  %v313_v36 = vpop.f32.mrb[27].mxu0 }
 0x165   :  { %v314_v37 = vadd.f32 %v1310_v17, %v313_v36  ;;  %950 = vmatprep.mubr.f32.mxu1 %v366_v32 }
 0x166   :  { %951 = vmatmul.mubr.f32.gmra.mrb[24].mxu1 %v367_v34  ;;  %v369_v40 = vmax.f32 %v319_v35, 0.0 }
 0x167   :  { %v368_v38 = vmax.f32 %v314_v37, 0.0  ;;  %v878_v39 = vpop.f32.mrb[28].mxu0 }
 0x168   :  { %v329_v41 = vadd.f32 %v878_v39, %v1310_v17  ;;  %v323_v44 = vpop.f32.mrb[29].mxu0 }
 0x169   :  { %v324_v45 = vadd.f32 %v1310_v17, %v323_v44  ;;  %953 = vmatprep.mubr.f32.mxu1 %v368_v38 }
 0x16a   :  { %954 = vmatmul.mubr.f32.gmra.mrb[26].mxu1 %v369_v40  ;;  %v371_v14 = vmax.f32 %v329_v41, 0.0 }
 0x16b   :  { %v370_v46 = vmax.f32 %v324_v45, 0.0  ;;  %v881_v49 = vpop.f32.mrb[30].mxu0 }
 0x16c   :  { %v339_v15 = vadd.f32 %v881_v49, %v1310_v17  ;;  %v333_v16 = vpop.f32.mrb[31].mxu0 }
 0x16d   :  { %v334_v18 = vadd.f32 %v1310_v17, %v333_v16  ;;  %956 = vmatprep.mubr.f32.mxu1 %v370_v46 }
 0x16e   :  { %957 = vmatmul.mubr.f32.gmra.mrb[28].mxu1 %v371_v14  ;;  %v373_v20 = vmax.f32 %v339_v15, 0.0 }
 0x16f   :  { %v372_v19 = vmax.f32 %v334_v18, 0.0 }
 0x171   :  { %959 = vmatprep.mubr.f32.mxu1 %v372_v19 }
 0x172   :  { %960 = vmatmul.mubr.f32.gmra.mrb[30].mxu1 %v373_v20 }
 0x209   :  { %v916_v22 = vpop.f32.mrb[0].mxu1 }
 0x20a   :  { %v469_v23 = vadd.f32 %v916_v22, %v1347_v21  ;;  %v463_v24 = vpop.f32.mrb[1].mxu1 }
 0x20b   :  { %v464_v25 = vadd.f32 %v1347_v21, %v463_v24 }
 0x20c   :  { %v623_v26 = vadd.f32 %v469_v23, %v1214_v42 }
 0x20d   :  { %v622_v17 = vadd.f32 %v464_v25, %v1211_v9  ;;  %v919_v27 = vpop.f32.mrb[2].mxu1 }
 0x20e   :  { %655 = vst [vmem:[#allocation8 + $0x8] sm:$0xff] %v623_v26  ;;  %v479_v28 = vadd.f32 %v919_v27, %v1347_v21  ;;  %v473_v29 = vpop.f32.mrb[3].mxu1 }
 0x20f   :  { %654 = vst [vmem:[#allocation8] sm:$0xff] %v622_v17  ;;  %v474_v30 = vadd.f32 %v1347_v21, %v473_v29 }
 0x210   :  { %v625_v31 = vadd.f32 %v479_v28, %v1220_v47 }
 0x211   :  { %v624_v32 = vadd.f32 %v474_v30, %v1216_v43  ;;  %v922_v33 = vpop.f32.mrb[4].mxu1 }
 0x212   :  { %657 = vst [vmem:[#allocation8 + $0x18] sm:$0xff] %v625_v31  ;;  %v489_v34 = vadd.f32 %v922_v33, %v1347_v21  ;;  %v483_v35 = vpop.f32.mrb[5].mxu1 }
 0x213   :  { %656 = vst [vmem:[#allocation8 + $0x10] sm:$0xff] %v624_v32  ;;  %v484_v9 = vadd.f32 %v1347_v21, %v483_v35 }
 0x214   :  { %v627_v42 = vadd.f32 %v489_v34, %v1226_v50 }
 0x215   :  { %v626_v36 = vadd.f32 %v484_v9, %v1222_v48  ;;  %v925_v37 = vpop.f32.mrb[6].mxu1 }
 0x216   :  { %659 = vst [vmem:[#allocation8 + $0x28] sm:$0xff] %v627_v42  ;;  %v499_v38 = vadd.f32 %v925_v37, %v1347_v21  ;;  %v493_v39 = vpop.f32.mrb[7].mxu1 }
 0x217   :  { %658 = vst [vmem:[#allocation8 + $0x20] sm:$0xff] %v626_v36  ;;  %v494_v43 = vadd.f32 %v1347_v21, %v493_v39 }
 0x218   :  { %v629_v47 = vadd.f32 %v499_v38, %v1232_v52 }
 0x219   :  { %v628_v40 = vadd.f32 %v494_v43, %v1228_v51  ;;  %v928_v41 = vpop.f32.mrb[8].mxu1 }
 0x21a   :  { %661 = vst [vmem:[#allocation8 + $0x38] sm:$0xff] %v629_v47  ;;  %v509_v44 = vadd.f32 %v928_v41, %v1347_v21  ;;  %v503_v45 = vpop.f32.mrb[9].mxu1 }
 0x21b   :  { %660 = vst [vmem:[#allocation8 + $0x30] sm:$0xff] %v628_v40  ;;  %v504_v48 = vadd.f32 %v1347_v21, %v503_v45 }
 0x21c   :  { %v631_v50 = vadd.f32 %v509_v44, %v1238_v54 }
 0x21d   :  { %v630_v46 = vadd.f32 %v504_v48, %v1234_v53  ;;  %v931_v49 = vpop.f32.mrb[10].mxu1 }
 0x21e   :  { %663 = vst [vmem:[#allocation8 + $0x48] sm:$0xff] %v631_v50  ;;  %v519_v14 = vadd.f32 %v931_v49, %v1347_v21  ;;  %v513_v15 = vpop.f32.mrb[11].mxu1 }
 0x21f   :  { %662 = vst [vmem:[#allocation8 + $0x40] sm:$0xff] %v630_v46  ;;  %v514_v51 = vadd.f32 %v1347_v21, %v513_v15 }
 0x220   :  { %v633_v52 = vadd.f32 %v519_v14, %v1244_v56 }
 0x221   :  { %v632_v16 = vadd.f32 %v514_v51, %v1240_v55  ;;  %v934_v18 = vpop.f32.mrb[12].mxu1 }
 0x222   :  { %665 = vst [vmem:[#allocation8 + $0x58] sm:$0xff] %v633_v52  ;;  %v529_v19 = vadd.f32 %v934_v18, %v1347_v21  ;;  %v523_v20 = vpop.f32.mrb[13].mxu1 }
 0x223   :  { %664 = vst [vmem:[#allocation8 + $0x50] sm:$0xff] %v632_v16  ;;  %v524_v53 = vadd.f32 %v1347_v21, %v523_v20 }
 0x224   :  { %v635_v54 = vadd.f32 %v529_v19, %v1250_v58 }
 0x225   :  { %v634_v22 = vadd.f32 %v524_v53, %v1246_v57  ;;  %v937_v23 = vpop.f32.mrb[14].mxu1 }
 0x226   :  { %667 = vst [vmem:[#allocation8 + $0x68] sm:$0xff] %v635_v54  ;;  %v539_v24 = vadd.f32 %v937_v23, %v1347_v21  ;;  %v533_v25 = vpop.f32.mrb[15].mxu1 }
 0x227   :  { %666 = vst [vmem:[#allocation8 + $0x60] sm:$0xff] %v634_v22  ;;  %v534_v55 = vadd.f32 %v1347_v21, %v533_v25 }
 0x228   :  { %v637_v56 = vadd.f32 %v539_v24, %v1256_v60 }
 0x229   :  { %v636_v26 = vadd.f32 %v534_v55, %v1252_v59  ;;  %v940_v17 = vpop.f32.mrb[16].mxu1 }
 0x22a   :  { %669 = vst [vmem:[#allocation8 + $0x78] sm:$0xff] %v637_v56  ;;  %v549_v27 = vadd.f32 %v940_v17, %v1347_v21  ;;  %v543_v28 = vpop.f32.mrb[17].mxu1 }
 0x22b   :  { %668 = vst [vmem:[#allocation8 + $0x70] sm:$0xff] %v636_v26  ;;  %v544_v57 = vadd.f32 %v1347_v21, %v543_v28 }
 0x22c   :  { %v639_v58 = vadd.f32 %v549_v27, %v1262_v62 }
 0x22d   :  { %v638_v29 = vadd.f32 %v544_v57, %v1258_v61  ;;  %v943_v30 = vpop.f32.mrb[18].mxu1 }
 0x22e   :  { %671 = vst [vmem:[#allocation8 + $0x88] sm:$0xff] %v639_v58  ;;  %v559_v31 = vadd.f32 %v943_v30, %v1347_v21  ;;  %v553_v32 = vpop.f32.mrb[19].mxu1 }
 0x22f   :  { %670 = vst [vmem:[#allocation8 + $0x80] sm:$0xff] %v638_v29  ;;  %v554_v59 = vadd.f32 %v1347_v21, %v553_v32 }
 0x230   :  { %v641_v60 = vadd.f32 %v559_v31, %v1268_v0 }
 0x231   :  { %v640_v33 = vadd.f32 %v554_v59, %v1264_v63  ;;  %v946_v34 = vpop.f32.mrb[20].mxu1 }
 0x232   :  { %673 = vst [vmem:[#allocation8 + $0x98] sm:$0xff] %v641_v60  ;;  %v569_v35 = vadd.f32 %v946_v34, %v1347_v21  ;;  %v563_v9 = vpop.f32.mrb[21].mxu1 }
 0x233   :  { %672 = vst [vmem:[#allocation8 + $0x90] sm:$0xff] %v640_v33  ;;  %v564_v61 = vadd.f32 %v1347_v21, %v563_v9 }
 0x234   :  { %v643_v62 = vadd.f32 %v569_v35, %v1274_v2 }
 0x235   :  { %v642_v42 = vadd.f32 %v564_v61, %v1270_v1  ;;  %v949_v36 = vpop.f32.mrb[22].mxu1 }
 0x236   :  { %675 = vst [vmem:[#allocation8 + $0xa8] sm:$0xff] %v643_v62  ;;  %v579_v37 = vadd.f32 %v949_v36, %v1347_v21  ;;  %v573_v38 = vpop.f32.mrb[23].mxu1 }
 0x237   :  { %674 = vst [vmem:[#allocation8 + $0xa0] sm:$0xff] %v642_v42  ;;  %v574_v63 = vadd.f32 %v1347_v21, %v573_v38 }
 0x238   :  { %v645_v0 = vadd.f32 %v579_v37, %v1280_v4 }
 0x239   :  { %v644_v39 = vadd.f32 %v574_v63, %v1276_v3  ;;  %v952_v43 = vpop.f32.mrb[24].mxu1 }
 0x23a   :  { %677 = vst [vmem:[#allocation8 + $0xb8] sm:$0xff] %v645_v0  ;;  %v589_v47 = vadd.f32 %v952_v43, %v1347_v21  ;;  %v583_v40 = vpop.f32.mrb[25].mxu1 }
 0x23b   :  { %676 = vst [vmem:[#allocation8 + $0xb0] sm:$0xff] %v644_v39  ;;  %v584_v1 = vadd.f32 %v1347_v21, %v583_v40 }
 0x23c   :  { %v647_v2 = vadd.f32 %v589_v47, %v1286_v6 }
 0x23d   :  { %v646_v41 = vadd.f32 %v584_v1, %v1282_v5  ;;  %v955_v44 = vpop.f32.mrb[26].mxu1 }
 0x23e   :  { %679 = vst [vmem:[#allocation8 + $0xc8] sm:$0xff] %v647_v2  ;;  %v599_v45 = vadd.f32 %v955_v44, %v1347_v21  ;;  %v593_v48 = vpop.f32.mrb[27].mxu1 }
 0x23f   :  { %678 = vst [vmem:[#allocation8 + $0xc0] sm:$0xff] %v646_v41  ;;  %v594_v3 = vadd.f32 %v1347_v21, %v593_v48 }
 0x240   :  { %v649_v4 = vadd.f32 %v599_v45, %v1292_v8 }
 0x241   :  { %v648_v50 = vadd.f32 %v594_v3, %v1288_v7  ;;  %v958_v46 = vpop.f32.mrb[28].mxu1 }
 0x242   :  { %681 = vst [vmem:[#allocation8 + $0xd8] sm:$0xff] %v649_v4  ;;  %v609_v49 = vadd.f32 %v958_v46, %v1347_v21  ;;  %v603_v14 = vpop.f32.mrb[29].mxu1 }
 0x243   :  { %680 = vst [vmem:[#allocation8 + $0xd0] sm:$0xff] %v648_v50  ;;  %v604_v5 = vadd.f32 %v1347_v21, %v603_v14 }
 0x244   :  { %v651_v6 = vadd.f32 %v609_v49, %v1298_v11 }
 0x245   :  { %v650_v15 = vadd.f32 %v604_v5, %v1294_v10  ;;  %v961_v51 = vpop.f32.mrb[30].mxu1 }
 0x246   :  { %683 = vst [vmem:[#allocation8 + $0xe8] sm:$0xff] %v651_v6  ;;  %v619_v52 = vadd.f32 %v961_v51, %v1347_v21  ;;  %v613_v16 = vpop.f32.mrb[31].mxu1 }
 0x247   :  { %682 = vst [vmem:[#allocation8 + $0xe0] sm:$0xff] %v650_v15  ;;  %v614_v7 = vadd.f32 %v1347_v21, %v613_v16 }
 0x248   :  { %v653_v8 = vadd.f32 %v619_v52, %v1304_v13 }
 0x249   :  { %v652_v18 = vadd.f32 %v614_v7, %v1300_v12 }
 0x24a   :  { %685 = vst [vmem:[#allocation8 + $0xf8] sm:$0xff] %v653_v8 }
 0x24b   :  { %684 = vst [vmem:[#allocation8 + $0xf0] sm:$0xff] %v652_v18 }
 0x24c   :  { %690 = vsyncadd [#allocation4], 4032  ;;  %s1135_s4 = smov [#allocation8]  }
 0x24d   :  { %s691_s9 = sshll.u32 %s1135_s4, 4  ;;  %s692_s9 = int_to_ptr.vmem [resolvable:$true] %s691_s9 }
 0x24e   :  { %s1100_s10 = scalar_lea.vmem %s692_s9, 64  ;;  %s1104_s11 = scalar_lea.vmem %s692_s9, 4096 }
 0x24f   :  { %p1101_p10 = scmp.ne.s32.totalorder %s692_s9, %s1100_s10  ;;  %p1105_p11 = scmp.lt.s32.totalorder %s692_s9, %s692_s9 }
 0x250   :  { %p1106_p12 = scmp.lt.s32.totalorder %s1104_s11, %s1100_s10 }
 0x252   :  { %p1107_p13 = por %p1106_p12, %p1105_p11 }
 0x254   :  { %p1108_p0 = pnand %p1107_p13, %p1101_p10 }
 0x256   :  { %1111 = shalt.err (!%p1108_p0)
}
 0x257   :  { %s1112_s14 = scalar_lea.hbm %s1433_s5, 64 }
 0x258   :  { %p1113_p1 = scmp.ne.s32.totalorder %s1433_s5, %s1112_s14  ;;  %p1116_p2 = scmp.lt.u32.totalorder %s1112_s14, %s1433_s5 }
 0x25a   :  { %p1118_p3 = pnand %p1116_p2, %p1113_p1 }
 0x25c   :  { %1121 = shalt.err (!%p1118_p3)
}
 0x25d   :  { %697 = dma.vmem_to_hbm [thread:$0]  %s692_s9, 64, %s1433_s5, [#allocation4], %s1132_s17, %s1132_s17, %s1133_s18  }
 0x25e   :  { %1126 = dma.done.wait [#allocation4], 4096  }
 0x25f   :  { %1127 = vsyncadd [#allocation4], 4294963200 }
 0x260   :  { %701 = vsyncpa [#allocation3], 1 }
 0x261   :  { %702 = vsyncpa [#allocation6], 1 }
 0x262   :  { %703 = vsyncpa [#allocation4], 1 }

</bundles_post_ra>
